<compile_context>
chip_gen: v5e
topology: v5e:2x2
jax: 0.10.0
libtpu: 0.0.40
codegen_flags: <defaults>
</compile_context>

<pallas_src>
import functools

import jax
import jax.numpy as jnp
from jax.experimental import pallas as pl
from jax.experimental.pallas import tpu as pltpu


def _keep_threshold(dropout_p):
    """uint32 threshold: keep iff bits >= threshold  =>  P(keep) = 1 - p."""
    return min(int(round(float(dropout_p) * (1 << 32))), (1 << 32) - 1)


def _pick_spatial_tile(hw, c_in, c_out, with_mask, budget_bytes=4 * 1024 * 1024):
    """Largest lane-dense (multiple-of-128) tile dividing hw within a VMEM budget."""
    if hw % 128 != 0:
        return hw  # full-extent block is always legal
    # f32 x + f32 out (+ u32 mask), double-buffered, per spatial column.
    per_col = 4 * 2 * (c_in + c_out + (c_in if with_mask else 0))
    max_t = max(128, (budget_bytes // per_col) // 128 * 128)
    t = 128
    while t * 2 <= max_t and hw % (t * 2) == 0:
        t *= 2
    return t


def _inc_dropout_kernel(*refs, c_in, c_out, keep_threshold, apply_dropout, use_mxu):
    if apply_dropout:
        x_ref, rbits_ref, w_ref, b_ref, o_ref = refs
    else:
        x_ref, w_ref, b_ref, o_ref = refs
        rbits_ref = None

    x = x_ref[0].astype(jnp.float32)                      # (C_in, T), lane-dense

    if apply_dropout:
        # Integer threshold compare: no float conversion, no extra multiply.
        keep = rbits_ref[0] >= jnp.uint32(keep_threshold)
        x = jnp.where(keep, x, jnp.float32(0.0))

    w = w_ref[...].astype(jnp.float32)                    # (C_out, C_in), 1/(1-p) pre-folded
    b = b_ref[...].astype(jnp.float32)                    # (C_out, 1)
    t = x.shape[-1]

    if use_mxu:
        acc = jnp.dot(w, x, preferred_element_type=jnp.float32) + b
    else:
        # Tiny channel counts: unrolled broadcasted FMAs on the VPU.
        acc = jnp.broadcast_to(b, (c_out, t))
        for ci in range(c_in):
            acc = acc + w[:, ci:ci + 1] * x[ci:ci + 1, :]

    o_ref[0] = acc.astype(o_ref.dtype)


def inc_dropout_forward(x_nchw, weight, bias, *, dropout_p=0.3, training=False, seed=0):
    """x_nchw: (N, C_in, H, W); weight: (C_out, C_in, 1, 1); bias: (C_out,)."""
    N, C_in, H, W = x_nchw.shape
    C_out = weight.shape[0]
    HW = H * W
    apply_dropout = bool(training) and float(dropout_p) > 0.0

    # NCHW viewed channel-major: (N, C_in, H*W). Reshape only — no transpose.
    x3 = x_nchw.reshape(N, C_in, HW)
    w_mat = weight.reshape(C_out, C_in).astype(jnp.float32)
    if apply_dropout:
        w_mat = w_mat * jnp.float32(1.0 / (1.0 - float(dropout_p)))
    b_col = bias.reshape(C_out, 1).astype(jnp.float32)

    T = _pick_spatial_tile(HW, C_in, C_out, apply_dropout)
    grid = (N, HW // T)

    threshold = _keep_threshold(dropout_p) if apply_dropout else 0
    use_mxu = (C_in >= 64) and (C_out >= 64)

    kernel = functools.partial(
        _inc_dropout_kernel,
        c_in=C_in,
        c_out=C_out,
        keep_threshold=threshold,
        apply_dropout=apply_dropout,
        use_mxu=use_mxu,
    )

    x_spec = pl.BlockSpec((1, C_in, T), lambda n, s: (n, 0, s))
    w_spec = pl.BlockSpec((C_out, C_in), lambda n, s: (0, 0))
    b_spec = pl.BlockSpec((C_out, 1), lambda n, s: (0, 0))
    out_spec = pl.BlockSpec((1, C_out, T), lambda n, s: (n, 0, s))

    if apply_dropout:
        rbits = jax.random.bits(jax.random.PRNGKey(seed), (N, C_in, HW), dtype=jnp.uint32)
        rbits_spec = pl.BlockSpec((1, C_in, T), lambda n, s: (n, 0, s))
        in_specs = [x_spec, rbits_spec, w_spec, b_spec]
        args = (x3, rbits, w_mat, b_col)
    else:
        in_specs = [x_spec, w_spec, b_spec]
        args = (x3, w_mat, b_col)

    itemsize = jnp.dtype(x_nchw.dtype).itemsize
    bytes_accessed = (
        N * HW * C_in * itemsize            # x
        + N * HW * C_out * itemsize         # out
        + C_out * C_in * 4 + C_out * 4      # weights + bias
        + (N * HW * C_in * 4 if apply_dropout else 0)  # uint32 mask bits
    )
    cost = pl.CostEstimate(
        flops=2 * N * HW * C_in * C_out,
        transcendentals=0,
        bytes_accessed=bytes_accessed,
    )

    out3 = pl.pallas_call(
        kernel,
        out_shape=jax.ShapeDtypeStruct((N, C_out, HW), x_nchw.dtype),
        grid=grid,
        in_specs=in_specs,
        out_specs=out_spec,
        compiler_params=pltpu.CompilerParams(
            dimension_semantics=("parallel", "parallel"),
            vmem_limit_bytes=32 * 1024 * 1024,
        ),
        cost_estimate=cost,
    )(*args)

    # (N, C_out, H*W) -> NCHW is a free reshape.
    return out3.reshape(N, C_out, H, W)


if __name__ == "__main__":
    key = jax.random.PRNGKey(0)
    k_x, k_w, k_b = jax.random.split(key, 3)

    N, C_in, C_out, H, W = 2, 4, 8, 16, 16

    x = jax.random.normal(k_x, (N, C_in, H, W), dtype=jnp.float32)

    # Deterministic Conv2d(kernel_size=1)-style init: U(-1/sqrt(fan_in), 1/sqrt(fan_in))
    fan_in = C_in * 1 * 1
    bound = 1.0 / (fan_in ** 0.5)
    weight = jax.random.uniform(k_w, (C_out, C_in, 1, 1), jnp.float32, -bound, bound)
    bias = jax.random.uniform(k_b, (C_out,), jnp.float32, -bound, bound)

    w2 = weight.reshape(C_out, C_in)
    hi = jax.lax.Precision.HIGHEST

    # Eval mode: dropout is identity -> must match a pure-JAX 1x1 conv.
    y_eval = jax.block_until_ready(
        inc_dropout_forward(x, weight, bias, dropout_p=0.3, training=False)
    )
    y_ref = jnp.einsum("nchw,oc->nohw", x, w2, precision=hi) + bias.reshape(1, C_out, 1, 1)
    assert y_eval.shape == (N, C_out, H, W)
    assert jnp.allclose(y_eval, y_ref, atol=1e-4, rtol=1e-4)

    # Training mode: rebuild the exact same keep mask the wrapper uses and
    # compare against a pure-JAX dropout + 1x1 conv reference.
    p, seed = 0.3, 1234
    y_train = jax.block_until_ready(
        inc_dropout_forward(x, weight, bias, dropout_p=p, training=True, seed=seed)
    )
    rbits = jax.random.bits(jax.random.PRNGKey(seed), (N, C_in, H * W), dtype=jnp.uint32)
    keep = (rbits >= jnp.uint32(_keep_threshold(p))).reshape(N, C_in, H, W)
    x_drop = jnp.where(keep, x, 0.0) * (1.0 / (1.0 - p))
    y_train_ref = (
        jnp.einsum("nchw,oc->nohw", x_drop, w2, precision=hi) + bias.reshape(1, C_out, 1, 1)
    )
    assert y_train.shape == (N, C_out, H, W)
    assert bool(jnp.all(jnp.isfinite(y_train)))
    assert jnp.allclose(y_train, y_train_ref, atol=1e-4, rtol=1e-4)

    print("KERNEL_OK")
</pallas_src>

<mosaic_0001>
module attributes {stable_mosaic.version = 11 : i64} {
  func.func @_inc_dropout_kernel(%arg0: i32, %arg1: i32, %arg2: memref<1x4x256xf32, #tpu.memory_space<vmem>>, %arg3: memref<8x4xf32, #tpu.memory_space<vmem>>, %arg4: memref<8x1xf32, #tpu.memory_space<vmem>>, %arg5: memref<1x8x256xf32, #tpu.memory_space<vmem>>) attributes {dimension_semantics = [#tpu.dimension_semantics<parallel>, #tpu.dimension_semantics<parallel>], iteration_bounds = array<i64: 2, 1>, scalar_prefetch = 0 : i64, scratch_operands = 0 : i64, tpu.core_type = #tpu.core_type<tc>, window_params = [{transform_indices = @transform_0, window_bounds = array<i64: 1, 4, 256>}, {pipeline_mode = #tpu.pipeline_mode<synchronous>, transform_indices = @transform_1, window_bounds = array<i64: 8, 4>}, {pipeline_mode = #tpu.pipeline_mode<synchronous>, transform_indices = @transform_2, window_bounds = array<i64: 8, 1>}, {transform_indices = @transform_3, window_bounds = array<i64: 1, 8, 256>}]} {
    %c0 = arith.constant 0 : index
    %c0_0 = arith.constant 0 : index
    %c0_1 = arith.constant 0 : index
    %0 = vector.load %arg2[%c0, %c0_0, %c0_1] : memref<1x4x256xf32, #tpu.memory_space<vmem>>, vector<1x4x256xf32>
    %1 = vector.shape_cast %0 : vector<1x4x256xf32> to vector<4x256xf32>
    %c0_2 = arith.constant 0 : index
    %c0_3 = arith.constant 0 : index
    %2 = vector.load %arg3[%c0_2, %c0_3] : memref<8x4xf32, #tpu.memory_space<vmem>>, vector<8x4xf32>
    %c0_4 = arith.constant 0 : index
    %c0_5 = arith.constant 0 : index
    %3 = vector.load %arg4[%c0_4, %c0_5] : memref<8x1xf32, #tpu.memory_space<vmem>>, vector<8x1xf32>
    %4 = vector.shape_cast %3 : vector<8x1xf32> to vector<8x1xf32>
    %5 = vector.broadcast %4 : vector<8x1xf32> to vector<8x256xf32>
    %6 = vector.extract_strided_slice %2 {offsets = [0, 0], sizes = [8, 1], strides = [1, 1]} : vector<8x4xf32> to vector<8x1xf32>
    %7 = vector.extract_strided_slice %1 {offsets = [0, 0], sizes = [1, 256], strides = [1, 1]} : vector<4x256xf32> to vector<1x256xf32>
    %8 = vector.broadcast %6 : vector<8x1xf32> to vector<8x256xf32>
    %9 = vector.broadcast %7 : vector<1x256xf32> to vector<8x256xf32>
    %10 = arith.mulf %8, %9 : vector<8x256xf32>
    %11 = arith.addf %5, %10 : vector<8x256xf32>
    %12 = vector.extract_strided_slice %2 {offsets = [0, 1], sizes = [8, 1], strides = [1, 1]} : vector<8x4xf32> to vector<8x1xf32>
    %13 = vector.extract_strided_slice %1 {offsets = [1, 0], sizes = [1, 256], strides = [1, 1]} : vector<4x256xf32> to vector<1x256xf32>
    %14 = vector.broadcast %12 : vector<8x1xf32> to vector<8x256xf32>
    %15 = vector.broadcast %13 : vector<1x256xf32> to vector<8x256xf32>
    %16 = arith.mulf %14, %15 : vector<8x256xf32>
    %17 = arith.addf %11, %16 : vector<8x256xf32>
    %18 = vector.extract_strided_slice %2 {offsets = [0, 2], sizes = [8, 1], strides = [1, 1]} : vector<8x4xf32> to vector<8x1xf32>
    %19 = vector.extract_strided_slice %1 {offsets = [2, 0], sizes = [1, 256], strides = [1, 1]} : vector<4x256xf32> to vector<1x256xf32>
    %20 = vector.broadcast %18 : vector<8x1xf32> to vector<8x256xf32>
    %21 = vector.broadcast %19 : vector<1x256xf32> to vector<8x256xf32>
    %22 = arith.mulf %20, %21 : vector<8x256xf32>
    %23 = arith.addf %17, %22 : vector<8x256xf32>
    %24 = vector.extract_strided_slice %2 {offsets = [0, 3], sizes = [8, 1], strides = [1, 1]} : vector<8x4xf32> to vector<8x1xf32>
    %25 = vector.extract_strided_slice %1 {offsets = [3, 0], sizes = [1, 256], strides = [1, 1]} : vector<4x256xf32> to vector<1x256xf32>
    %26 = vector.broadcast %24 : vector<8x1xf32> to vector<8x256xf32>
    %27 = vector.broadcast %25 : vector<1x256xf32> to vector<8x256xf32>
    %28 = arith.mulf %26, %27 : vector<8x256xf32>
    %29 = arith.addf %23, %28 : vector<8x256xf32>
    %c0_6 = arith.constant 0 : index
    %c0_7 = arith.constant 0 : index
    %c0_8 = arith.constant 0 : index
    %30 = vector.load %arg5[%c0_6, %c0_7, %c0_8] : memref<1x8x256xf32, #tpu.memory_space<vmem>>, vector<1x8x256xf32>
    %31 = vector.shape_cast %30 : vector<1x8x256xf32> to vector<8x256xf32>
    %32 = vector.shape_cast %29 : vector<8x256xf32> to vector<1x8x256xf32>
    tpu.vector_store %arg5[%c0_6, %c0_7, %c0_8], %32 {strides = array<i32>} : memref<1x8x256xf32, #tpu.memory_space<vmem>>, vector<1x8x256xf32>,
    return
  }
  func.func @transform_0(%arg0: i32, %arg1: i32) -> (i32, i32, i32) {
    %c0_i32 = arith.constant 0 : i32
    %c0_i32_0 = arith.constant 0 : i32
    return %arg0, %c0_i32, %arg1 : i32, i32, i32
  }
  func.func @transform_1(%arg0: i32, %arg1: i32) -> (i32, i32) {
    %c0_i32 = arith.constant 0 : i32
    %c0_i32_0 = arith.constant 0 : i32
    %c0_i32_1 = arith.constant 0 : i32
    return %c0_i32, %c0_i32_0 : i32, i32
  }
  func.func @transform_2(%arg0: i32, %arg1: i32) -> (i32, i32) {
    %c0_i32 = arith.constant 0 : i32
    %c0_i32_0 = arith.constant 0 : i32
    %c0_i32_1 = arith.constant 0 : i32
    return %c0_i32, %c0_i32_0 : i32, i32
  }
  func.func @transform_3(%arg0: i32, %arg1: i32) -> (i32, i32, i32) {
    %c0_i32 = arith.constant 0 : i32
    %c0_i32_0 = arith.constant 0 : i32
    return %arg0, %c0_i32, %arg1 : i32, i32, i32
  }
}

</mosaic_0001>

<bundles_post_ra>
// kernel: tpu_custom_call.1
= control target key start
LH: loop header
LB: loop body
LE: loop exit
PB: predicated region body
PF: predicated region fallthrough
CT: control target
= control target key end

     0   :  { %8 = vsyncpa [#allocation3], 0  ;;  %s653_s0 = inlined_call_operand.vmem [shape: f32[2,4,256], index: 0, kind: input, shape index: {}]   ;;  %s654_s1 = inlined_call_operand.vmem [shape: f32[8,4], index: 1, kind: input, shape index: {}]   ;;  %s655_s2 = inlined_call_operand.vmem [shape: f32[8,1], index: 2, kind: input, shape index: {}]   ;;  %s656_s3 = inlined_call_operand.hbm [shape: f32[2,8,256], index: 3, kind: output, shape index: {}]  }
   0x1   :  { %10 = vsyncpa [#allocation3 + $0x1], 0  ;;  %s546_s12 = smov 0   ;;  %s548_s13 = smov 0  }
   0x2   :  { %s550_s14 = smov 0   ;;  %s552_s15 = smov 0  }
   0x3   :  { %s554_s16 = smov 0   ;;  %s556_s17 = smov 0  }
   0x4 LB: > { %s363_s18 = sadd.s32 4294967295, %s520_s17   ;;  %s364_s19 = sadd.s32 4294967294, %s520_s17   ;;  %s520_s17 = sphi %s556_s17, %s16_s17   ;;  %s516_s16 = sphi %s554_s16, %s663_s16   ;;  %s512_s15 = sphi %s552_s15, %s662_s15   ;;  %s508_s14 = sphi %s550_s14, %s661_s14   ;;  %s504_s13 = sphi %s548_s13, %s660_s13   ;;  %s500_s12 = sphi %s546_s12, %s659_s12  }
   0x5   : > { %s28_s20 = sadd.s32 1, %s516_s16  ;;  %s107_s21 = sadd.s32 1, %s508_s14 }
   0x6   : > { %p30_p0 = scmp.ge.s32.totalorder %s28_s20, 2  ;;  %p117_p1 = scmp.ne.s32.totalorder %s508_s14, %s504_s13 }
   0x7   : > { %p118_p2 = scmp.eq.s32.totalorder %s363_s18, 1  ;;  %p123_p3 = scmp.ne.s32.totalorder %s504_s13, %s500_s12 }
   0x8   : > { %s665_s20 = smov (%p30_p0, %s28_s20), 0  ;;  %p124_p5 = scmp.eq.s32.totalorder %s364_s19, 1 }
   0x9   : > { %p586_p4 = por %p118_p2, %p117_p1  ;;  %s102_s23 = ssub.s32 %s516_s16, %s665_s20 }
   0xa   : > { %p367_p6 = scmp.ge.s32.totalorder %s520_s17, 1  ;;  %p105_p7 = scmp.eq.s32.totalorder %s102_s23, 0 }
   0xb   : > { %p593_p8 = por %p124_p5, %p123_p3  ;;  %p161_p9 = scmp.lt.s32.totalorder %s520_s17, 3 }
   0xc   : > { %s599_s25 = scalar_select %p105_p7, %s508_s14, %s107_s21  }
   0xd   : > { %p162_p10 = pnand %p367_p6, %p161_p9 }
   0xe   : > { %p190_p11 = scmp.lt.s32.totalorder (!%p162_p10), %s512_s15, 1  ;;  %s186_s8 = sand.u32 (!%p162_p10), 1, %s504_s13  }
   0xf   : > { %165 = sbr.rel (%p162_p10) target bundleno = 157 (0x9d), region = 32  ;;  %s368_s9 = sshll.u32 (!%p162_p10), %s186_s8, 4 }
  0x10   : > { %s377_s10 = sshll.u32 (!%p162_p10), %s512_s15, 4  ;;  %s269_s26 = scalar_lea.sflag (!%p162_p10), [#allocation3], %s186_s8 }
  0x11   : > { %s282_s19 = scalar_lea.hbm (!%p162_p10), %s656_s3, %s377_s10 }
  0x12   : > { %s286_s23 = sshll.u32 (!%p162_p10), %s282_s19, 4  ;;  %s287_s23 = int_to_ptr.hbm [resolvable:$true] %s286_s23 }
  0x13   : > { %s456_s27 = sshra.s32 (!%p162_p10), %s287_s23, 4  ;;  %s457_s27 = int_to_ptr.hbm [resolvable:$true] %s456_s27 }
  0x14   : > { %v201_v0 = vld [vmem:[%s654_s1] sm:$0xff]  ;;  %v522_v1 = vmov 0   ;;  %v523_v2 = vmov 1   ;;  %v524_v3 = vmov 3   ;;  %v525_v5 = vmov 2   ;;  %s191_s30 = scalar_select %p190_p11, %s512_s15, 1 }
  0x15   : > { %437 = vset.pattern.permute.xlu0 %v522_v1  ;;  %438 = vset.pattern.permute.xlu1 %v523_v2  ;;  %v202_v4 = vld [vmem:[%s655_s2] sm:$0xff]  ;;  %s188_s15 = scalar_lea.vmem [#allocation2], %s368_s9  ;;  %s458_s28 = scalar_lea.hbm %s457_s27, 16 }
  0x16   : > { %210 = vperm.xlu0 %437, %v201_v0   ;;  %225 = vperm.xlu1 %438, %v201_v0   ;;  %s376_s4 = sshll.u32 %s191_s30, 3  ;;  %s284_s21 = sshll.u32 %s188_s15, 4  ;;  %s285_s21 = int_to_ptr.vmem [resolvable:$true] %s284_s21 }
  0x17   : > { %440 = vset.pattern.permute.xlu2 %v524_v3  ;;  %s197_s7 = scalar_lea.vmem %s653_s0, %s376_s4  ;;  %p459_p12 = scmp.ne.s32.totalorder %s457_s27, %s458_s28 }
  0x18   : > { %253 = vperm.xlu2 %440, %v201_v0   ;;  %v200_v6 = vld [vmem:[%s197_s7] sm:$0xff]  ;;  %s462_s4 = scalar_lea.hbm %s656_s3, 32  ;;  %p463_p1 = scmp.lt.s32.totalorder %s457_s27, %s656_s3 }
  0x19   : > { %v214_v7 = vperm.slane %v200_v6, 0  ;;  %v215_v8 = vperm.slane %v200_v6, 4  ;;  %v228_v11 = vperm.slane %v200_v6, 1  ;;  %v229_v12 = vperm.slane %v200_v6, 5  ;;  %p460_p13 = pnand %p459_p12, %p586_p4  ;;  %p464_p2 = scmp.lt.s32.totalorder %s462_s4, %s458_s28 }
  0x1a   : > { %v242_v13 = vperm.slane %v200_v6, 2  ;;  %v243_v14 = vperm.slane %v200_v6, 6  ;;  %v256_v17 = vperm.slane %v200_v6, 3  ;;  %v257_v18 = vperm.slane %v200_v6, 7 }
  0x1b   : > { %v218_v15 = vperm.slane %v214_v7, 0  ;;  %v219_v16 = vperm.slane %v215_v8, 0  ;;  %v232_v19 = vperm.slane %v228_v11, 1  ;;  %v233_v20 = vperm.slane %v229_v12, 1  ;;  %p461_p0 = pneg %p460_p13  ;;  %p465_p3 = por %p464_p2, %p463_p1 }
  0x1c   : > { %v246_v21 = vperm.slane %v242_v13, 2  ;;  %v247_v22 = vperm.slane %v243_v14, 2  ;;  %v260_v25 = vperm.slane %v256_v17, 3  ;;  %v261_v26 = vperm.slane %v257_v18, 3 }
  0x1d   : > { %p466_p5 = pnand %p465_p3, %p461_p0 }
  0x1e   : > { %205 = vperm.xlu0 %437, %v202_v4   ;;  %439 = vset.pattern.permute.xlu1 %v525_v5 }
  0x1f   : > { %239 = vperm.xlu1 %439, %v201_v0  }
  0x26   : > { %441 = vset.pattern.permute.xlu0 %v524_v3 }
  0x72   : > { %v254_v28 = vpop.permute.xlu2 %253 }
  0x73   : > { %v262_v38 = vmul.f32 %v260_v25, %v254_v28  ;;  %v263_v39 = vmul.f32 %v261_v26, %v254_v28 }
  0x88   : > { %v211_v9 = vpop.permute.xlu0 %210  ;;  %v226_v10 = vpop.permute.xlu1 %225 }
  0x89   : > { %v220_v23 = vmul.f32 %v218_v15, %v211_v9  ;;  %v221_v24 = vmul.f32 %v219_v16, %v211_v9  ;;  %v234_v29 = vmul.f32 %v232_v19, %v226_v10  ;;  %v235_v30 = vmul.f32 %v233_v20, %v226_v10 }
  0x90   : > { %v206_v27 = vpop.permute.xlu0 %205 }
  0x91   : > { %v222_v31 = vadd.f32 %v220_v23, %v206_v27  ;;  %v223_v32 = vadd.f32 %v221_v24, %v206_v27  ;;  %v240_v33 = vpop.permute.xlu1 %239 }
  0x92   : > { %v248_v34 = vmul.f32 %v246_v21, %v240_v33  ;;  %v249_v35 = vmul.f32 %v247_v22, %v240_v33 }
  0x93   : > { %v236_v36 = vadd.f32 %v234_v29, %v222_v31  ;;  %v237_v37 = vadd.f32 %v235_v30, %v223_v32 }
  0x95   : > { %v250_v40 = vadd.f32 %v248_v34, %v236_v36  ;;  %v251_v41 = vadd.f32 %v249_v35, %v237_v37 }
  0x97   : > { %v264_v42 = vadd.f32 %v262_v38, %v250_v40  ;;  %v265_v43 = vadd.f32 %v263_v39, %v251_v41 }
  0x99   : > { %266 = vst [vmem:[%s188_s15] sm:$0xff] %v264_v42 }
  0x9a   : > { %267 = vst [vmem:[%s188_s15 + $0x8] sm:$0xff] %v265_v43 }
  0x9b   : > { %469 = shalt.err (!%p466_p5)
}
  0x9c   : > { %378 = dma.vmem_to_hbm [thread:$0]  (%p586_p4), %s285_s21, 256, %s287_s23, %s269_s26  }
  0x9d PF: > { %p384_p6 = scmp.ge.s32.totalorder %s520_s17, 2  ;;  %s298_s7 = sand.u32 1, %s500_s12  }
  0x9e   : > { %s299_s8 = scalar_lea.sflag [#allocation3], %s298_s7 }
  0x9f   : > { %p381_p7 = pnand %p384_p6, %p593_p8 }
  0xa1   : > { %p382_p9 = pneg %p381_p7 }
  0xa3   : > { %495 = dma.done.wait (%p382_p9), %s299_s8, 256  }
  0xa4   : > { %497 = vsyncadd (%p382_p9), %s299_s8, 4294967040  ;;  %s16_s17 = sadd.s32 1, %s520_s17   ;;  %s659_s12 = smov %s504_s13 }
  0xa5   : > { %p13_p10 = scmp.ge.s32.totalorder %s16_s17, 4   ;;  %s660_s13 = smov %s508_s14 }
  0xa6   : > { %s661_s14 = smov %s599_s25  ;;  %s662_s15 = smov %s516_s16 }
  0xa7   : > { %s663_s16 = smov %s665_s20  ;;  %15 = sbr.rel (!%p13_p10) target bundleno = 4 (0x4), region = 67 }
  0xac   :  { %305 = vsyncpa [#allocation3], 1 }
  0xad   :  { %307 = vsyncpa [#allocation3 + $0x1], 1 }

</bundles_post_ra>
